<compile_context>
chip_gen: v7x
topology: tpu7x:2x2x1
jax: 0.10.0
libtpu: 0.0.40
codegen_flags: <defaults>
</compile_context>

<pallas_src>
import jax
import jax.numpy as jnp
from jax.experimental import pallas as pl
from jax.experimental.pallas import tpu as pltpu


def _round_up(x, m):
    return ((x + m - 1) // m) * m


def _mlp_encoder_kernel(x_ref, w1_ref, b1_ref, o_ref):
    # fc1 on the MXU: bf16 (or f32) operands, f32 accumulation.
    h = jnp.dot(x_ref[...], w1_ref[...], preferred_element_type=jnp.float32)
    h = h + b1_ref[...]                      # (TB, H) + (1, H) broadcast, f32
    o_ref[...] = jnp.maximum(h, 0.0).astype(o_ref.dtype)


def mlp_encoder_forward(main, w1, b1, *, compute_dtype=jnp.bfloat16, tile_rows=2048):
    """main: [..., F] with arbitrary leading dims (agents, time, batch).
    Returns relu(main @ w1 + b1) with shape [..., H]."""
    lead_shape = main.shape[:-1]
    feat = main.shape[-1]
    hidden = w1.shape[1]

    x = main.reshape(-1, feat)               # _to_batch
    batch = x.shape[0]

    # Sublane multiple: 8 for f32, 16 for bf16 packing.
    sublane = 16 if jnp.dtype(compute_dtype) == jnp.dtype(jnp.bfloat16) else 8
    tb = max(sublane, min(int(tile_rows), _round_up(batch, sublane)))
    tb = _round_up(tb, sublane)

    # Pad ragged batch to a multiple of the tile so the last tile is full.
    padded = _round_up(batch, tb)
    if padded != batch:
        x = jnp.pad(x, ((0, padded - batch), (0, 0)))

    x = x.astype(compute_dtype)
    w1c = w1.astype(compute_dtype)
    b1_2d = b1.reshape(1, hidden).astype(jnp.float32)

    num_tiles = pl.cdiv(padded, tb)

    out = pl.pallas_call(
        _mlp_encoder_kernel,
        out_shape=jax.ShapeDtypeStruct((padded, hidden), jnp.float32),
        grid_spec=pltpu.PrefetchScalarGridSpec(
            num_scalar_prefetch=0,
            grid=(num_tiles,),
            in_specs=[
                pl.BlockSpec((tb, feat), lambda i: (i, 0)),       # tiled x (pipelined)
                pl.BlockSpec((feat, hidden), lambda i: (0, 0)),   # VMEM-resident weights
                pl.BlockSpec((1, hidden), lambda i: (0, 0)),      # VMEM-resident bias
            ],
            out_specs=pl.BlockSpec((tb, hidden), lambda i: (i, 0)),
        ),
        compiler_params=pltpu.CompilerParams(
            dimension_semantics=("parallel",)),                   # v7x: shard tiles over both TCs
    )(x, w1c, b1_2d)

    if padded != batch:
        out = out[:batch]
    return out.reshape(*lead_shape, hidden)   # _from_batch


def init_params(key, input_dim, hidden=64):
    """Deterministic init mimicking nn.Linear default (uniform +/- 1/sqrt(fan_in))."""
    k1, k2 = jax.random.split(key)
    lim = 1.0 / jnp.sqrt(jnp.float32(input_dim))
    w1 = jax.random.uniform(k1, (input_dim, hidden), jnp.float32, -lim, lim)
    b1 = jax.random.uniform(k2, (hidden,), jnp.float32, -lim, lim)
    return w1, b1


def _reference(main, w1, b1, compute_dtype):
    feat = main.shape[-1]
    hidden = w1.shape[1]
    x = main.reshape(-1, feat).astype(compute_dtype)
    h = jnp.dot(x, w1.astype(compute_dtype), preferred_element_type=jnp.float32)
    return jnp.maximum(h + b1.astype(jnp.float32), 0.0).reshape(*main.shape[:-1], hidden)


if __name__ == "__main__":
    # Small shapes: n_agents=2, time=8, batch=4, feature dim=32, hidden=64.
    n_agents, t_len, bs, feat, hidden = 2, 8, 4, 32, 64
    key = jax.random.PRNGKey(0)
    k_in, k_p, k_in2 = jax.random.split(key, 3)

    main = jax.random.normal(k_in, (n_agents, t_len, bs, feat), jnp.float32)
    w1, b1 = init_params(k_p, feat, hidden)

    # Default path (bf16 MXU inputs, f32 accumulation).
    out = mlp_encoder_forward(main, w1, b1)
    out = jax.block_until_ready(out)
    ref = _reference(main, w1, b1, jnp.bfloat16)
    assert out.shape == (n_agents, t_len, bs, hidden)
    assert jnp.allclose(out, ref, atol=1e-3, rtol=1e-3)

    # Ragged-batch path: B=80 rows, tile=32 -> pad to 96, 3 tiles, slice back.
    main2 = jax.random.normal(k_in2, (n_agents, t_len, 5, feat), jnp.float32)
    out2 = mlp_encoder_forward(main2, w1, b1, tile_rows=32)
    out2 = jax.block_until_ready(out2)
    ref2 = _reference(main2, w1, b1, jnp.bfloat16)
    assert out2.shape == (n_agents, t_len, 5, hidden)
    assert jnp.allclose(out2, ref2, atol=1e-3, rtol=1e-3)

    print("KERNEL_OK")
</pallas_src>

<mosaic_0001>
module attributes {stable_mosaic.version = 11 : i64} {
  func.func @_mlp_encoder_kernel(%arg0: i32, %arg1: memref<64x32xbf16, #tpu.memory_space<vmem>>, %arg2: memref<32x64xbf16, #tpu.memory_space<vmem>>, %arg3: memref<1x64xf32, #tpu.memory_space<vmem>>, %arg4: memref<64x64xf32, #tpu.memory_space<vmem>>) attributes {dimension_semantics = [#tpu.dimension_semantics<parallel>], iteration_bounds = array<i64: 1>, scalar_prefetch = 0 : i64, scratch_operands = 0 : i64, tpu.core_type = #tpu.core_type<tc>, window_params = [{transform_indices = @transform_0, window_bounds = array<i64: 64, 32>}, {pipeline_mode = #tpu.pipeline_mode<synchronous>, transform_indices = @transform_1, window_bounds = array<i64: 32, 64>}, {pipeline_mode = #tpu.pipeline_mode<synchronous>, transform_indices = @transform_2, window_bounds = array<i64: 1, 64>}, {transform_indices = @transform_3, window_bounds = array<i64: 64, 64>}]} {
    %c0 = arith.constant 0 : index
    %c0_0 = arith.constant 0 : index
    %0 = vector.load %arg1[%c0, %c0_0] : memref<64x32xbf16, #tpu.memory_space<vmem>>, vector<64x32xbf16>
    %c0_1 = arith.constant 0 : index
    %c0_2 = arith.constant 0 : index
    %1 = vector.load %arg2[%c0_1, %c0_2] : memref<32x64xbf16, #tpu.memory_space<vmem>>, vector<32x64xbf16>
    %cst = arith.constant dense<0.000000e+00> : vector<64x64xf32>
    %2 = tpu.matmul %0, %1, %cst {dimension_numbers = #tpu.dot_dimension_numbers<[1], [0], [0], [1], [0, 0, 1, 1], [], []>} : vector<64x32xbf16>, vector<32x64xbf16>, vector<64x64xf32> -> vector<64x64xf32>
    %c0_3 = arith.constant 0 : index
    %c0_4 = arith.constant 0 : index
    %3 = vector.load %arg3[%c0_3, %c0_4] : memref<1x64xf32, #tpu.memory_space<vmem>>, vector<1x64xf32>
    %4 = vector.broadcast %3 : vector<1x64xf32> to vector<64x64xf32>
    %5 = arith.addf %2, %4 : vector<64x64xf32>
    %cst_5 = arith.constant 0.000000e+00 : f32
    %6 = vector.broadcast %cst_5 : f32 to vector<64x64xf32>
    %7 = arith.maximumf %5, %6 : vector<64x64xf32>
    %c0_6 = arith.constant 0 : index
    %c0_7 = arith.constant 0 : index
    %8 = vector.load %arg4[%c0_6, %c0_7] : memref<64x64xf32, #tpu.memory_space<vmem>>, vector<64x64xf32>
    tpu.vector_store %arg4[%c0_6, %c0_7], %7 {strides = array<i32>} : memref<64x64xf32, #tpu.memory_space<vmem>>, vector<64x64xf32>,
    return
  }
  func.func @transform_0(%arg0: i32) -> (i32, i32) {
    %c0_i32 = arith.constant 0 : i32
    %c0_i32_0 = arith.constant 0 : i32
    return %arg0, %c0_i32 : i32, i32
  }
  func.func @transform_1(%arg0: i32) -> (i32, i32) {
    %c0_i32 = arith.constant 0 : i32
    %c0_i32_0 = arith.constant 0 : i32
    %c0_i32_1 = arith.constant 0 : i32
    return %c0_i32, %c0_i32_0 : i32, i32
  }
  func.func @transform_2(%arg0: i32) -> (i32, i32) {
    %c0_i32 = arith.constant 0 : i32
    %c0_i32_0 = arith.constant 0 : i32
    %c0_i32_1 = arith.constant 0 : i32
    return %c0_i32, %c0_i32_0 : i32, i32
  }
  func.func @transform_3(%arg0: i32) -> (i32, i32) {
    %c0_i32 = arith.constant 0 : i32
    %c0_i32_0 = arith.constant 0 : i32
    return %arg0, %c0_i32 : i32, i32
  }
}

</mosaic_0001>

<bundles_post_ra>
// kernel: tpu_custom_call.1
= control target key start
LH: loop header
LB: loop body
LE: loop exit
PB: predicated region body
PF: predicated region fallthrough
CT: control target
= control target key end

     0   :  { %vm67_vm0 = vcmask 261120   ;;  %s308_s0 = inlined_call_operand.vmem [shape: bf16[64,32], index: 0, kind: input, shape index: {}]   ;;  %s309_s1 = inlined_call_operand.vmem [shape: bf16[32,64], index: 1, kind: input, shape index: {}]   ;;  %s310_s2 = inlined_call_operand.vmem [shape: f32[1,64], index: 2, kind: input, shape index: {}]   ;;  %s311_s3 = inlined_call_operand.hbm [shape: f32[64,64], index: 3, kind: output, shape index: {}]  }
   0x1   :  { %v214_v0 = vld [vmem:[%s309_s1] sm:$0xff]   ;;  %v215_v1 = vld [vmem:[%s309_s1 + $0x8] sm:$0xff]   ;;  %v217_v3 = vld [vmem:[%s308_s0 + $0x10] sm:$0xff]  }
   0x2   :  { %195 = vmatprep.subr.bf16.mxu0 %v214_v0  ;;  %207 = vmatprep.subr.bf16.mxu1 %v214_v0  ;;  %v216_v2 = vld [vmem:[%s308_s0] sm:$0xff]   ;;  %v218_v4 = vld [vmem:[%s308_s0 + $0x8] sm:$0xff]   ;;  %v219_v5 = vld [vmem:[%s308_s0 + $0x18] sm:$0xff]  }
   0x3   :  { %196 = vmatpush3.bf16.msra.mxu0 %v214_v0  ;;  %209 = vmatpush3.bf16.msra.mxu1 %v214_v0 }
   0x4   :  { %197 = vmatprep.subr.bf16.mxu0 %v215_v1  ;;  %208 = vmatprep.subr.bf16.mxu1 %v215_v1 }
   0x5   :  { %199 = vmatprep.mubr.msk.bf16.mxu0 %vm67_vm0, %v216_v2  ;;  %203 = vmatprep.mubr.msk.bf16.mxu1 %vm67_vm0, %v217_v3 }
   0x6   :  { %8 = vsyncpa [#allocation3], 0  ;;  %v178_v6 = vld [vmem:[%s310_s2] ss:$0 sm:$0xff]  ;;  %vm153_vm1 = vcmask 523264   ;;  %s244_s0 = smov [#allocation2]  }
   0x7   :  { %198 = vmatpush3.bf16.msra.mxu0 %v215_v1  ;;  %210 = vmatpush3.bf16.msra.mxu1 %v215_v1  ;;  %s167_s25 = sshll.u32 %s244_s0, 4  ;;  %s168_s25 = int_to_ptr.vmem [resolvable:$true] %s167_s25 }
   0x8   :  { %s220_s2 = scalar_lea.vmem %s168_s25, 1024  ;;  %p225_p1 = scmp.lt.s32.totalorder %s168_s25, %s168_s25 }
   0x9   :  { %p221_p0 = scmp.ne.s32.totalorder %s168_s25, %s220_s2  ;;  %p226_p2 = scmp.lt.s32.totalorder %s220_s2, %s220_s2 }
   0xa   :  { %200 = vmatmul.mubr.msk.bf16.vlgmr.msra.gmra.mrb[0].mxu0 %vm67_vm0, %v218_v4  ;;  %204 = vmatmul.mubr.msk.bf16.vlgmr.msra.gmra.mrb[0].mxu1 %vm67_vm0, %v219_v5 }
   0xb   :  { %p227_p3 = por %p226_p2, %p225_p1 }
   0xd   :  { %p228_p4 = pnand %p227_p3, %p221_p0 }
  0xdd   :  { %v201_v7 = vpop.f32.mrb[0].mxu0  ;;  %v205_v8 = vpop.f32.mrb[0].mxu1 }
  0xde   :  { %v123_v9 = vadd.f32 %v201_v7, %v178_v6  ;;  %v139_v10 = vadd.f32 %v205_v8, %v178_v6  ;;  %v114_v11 = vpop.f32.mrb[1].mxu0  ;;  %v130_v12 = vpop.f32.mrb[1].mxu1 }
  0xdf   :  { %v115_v13 = vadd.f32 %v178_v6, %v114_v11  ;;  %v131_v14 = vadd.f32 %v178_v6, %v130_v12  ;;  %v202_v15 = vpop.f32.mrb[2].mxu0  ;;  %v206_v16 = vpop.f32.mrb[2].mxu1 }
  0xe0   :  { %v147_v17 = vmax.f32 %v123_v9, 0.0  ;;  %v151_v18 = vmax.f32 %v139_v10, 0.0  ;;  %v126_v19 = vadd.f32 %v202_v15, %v178_v6  ;;  %v142_v20 = vadd.f32 %v206_v16, %v178_v6  ;;  %v117_v21 = vpop.f32.mrb[3].mxu0  ;;  %v133_v22 = vpop.f32.mrb[3].mxu1 }
  0xe1   :  { %v145_v23 = vmax.f32 %v115_v13, 0.0  ;;  %v149_v24 = vmax.f32 %v131_v14, 0.0  ;;  %v118_v25 = vadd.f32 %v178_v6, %v117_v21  ;;  %v134_v26 = vadd.f32 %v178_v6, %v133_v22 }
  0xe2   :  { %156 = vst.msk [vmem:[#allocation2 + $0x10] sm:$0xff] %vm153_vm1, %v147_v17  ;;  %160 = vst.msk [vmem:[#allocation2 + $0x30] sm:$0xff] %vm153_vm1, %v151_v18  ;;  %v148_v27 = vmax.f32 %v126_v19, 0.0  ;;  %v152_v28 = vmax.f32 %v142_v20, 0.0 }
  0xe3   :  { %154 = vst.msk [vmem:[#allocation2] sm:$0xff] %vm153_vm1, %v145_v23  ;;  %158 = vst.msk [vmem:[#allocation2 + $0x20] sm:$0xff] %vm153_vm1, %v149_v24  ;;  %v146_v29 = vmax.f32 %v118_v25, 0.0  ;;  %v150_v30 = vmax.f32 %v134_v26, 0.0 }
  0xe4   :  { %157 = vst.msk [vmem:[#allocation2 + $0x18] sm:$0xff] %vm153_vm1, %v148_v27  ;;  %161 = vst.msk [vmem:[#allocation2 + $0x38] sm:$0xff] %vm153_vm1, %v152_v28 }
  0xe5   :  { %155 = vst.msk [vmem:[#allocation2 + $0x8] sm:$0xff] %vm153_vm1, %v146_v29  ;;  %159 = vst.msk [vmem:[#allocation2 + $0x28] sm:$0xff] %vm153_vm1, %v150_v30 }
  0xe6   :  { %231 = shalt.err (!%p228_p4)
}
  0xe7   :  { %s232_s28 = scalar_lea.hbm %s311_s3, 1024 }
  0xe8   :  { %p233_p5 = scmp.ne.s32.totalorder %s311_s3, %s232_s28  ;;  %p236_p6 = scmp.lt.u32.totalorder %s232_s28, %s311_s3 }
  0xea   :  { %p238_p7 = pnand %p236_p6, %p233_p5 }
  0xec   :  { %241 = shalt.err (!%p238_p7)
}
  0xed   :  { %s245_s6 = smov 128   ;;  %s246_s7 = smov 8  }
  0xee   :  { %173 = dma.vmem_to_hbm [thread:$0]  %s168_s25, 1024, %s311_s3, [#allocation3], %s245_s6, %s245_s6, %s246_s7  }
  0xef   :  { %242 = dma.done.wait [#allocation3], 1024  }
  0xf0   :  { %243 = vsyncadd [#allocation3], 4294966272 }
  0xf1   :  { %177 = vsyncpa [#allocation3], 1 }

</bundles_post_ra>
